<compile_context>
chip_gen: v7x
topology: tpu7x:2x2x1
jax: 0.10.0
libtpu: 0.0.40
codegen_flags: <defaults>
</compile_context>

<pallas_src>
import functools

import jax
import jax.numpy as jnp
from jax import lax
from jax.experimental import pallas as pl
from jax.experimental.pallas import tpu as pltpu


def _round_up(x, m):
    return ((x + m - 1) // m) * m


def _vmem_budget_bytes():
    """Generation-aware scoped-VMEM budget (<= ~75% of physical, cap 100 MiB)."""
    try:
        cap = pltpu.get_tpu_info().vmem_capacity_bytes
        cap = int(cap) if cap else 64 * 1024 * 1024
    except Exception:
        cap = 64 * 1024 * 1024          # conservative (v7x-sized) fallback
    return min((cap * 3) // 4, 100 * 1024 * 1024)


# --------------------------------------------------------------------------
# Pallas kernel: one (TM, k*k*Cin) @ (k*k*Cin, Cout) MXU matmul per row tile,
# f32 accumulation, written straight to the lane-dense output block.
# --------------------------------------------------------------------------
def _dilated_conv_kernel(taps_ref, w_ref, o_ref):
    o_ref[...] = jnp.dot(
        taps_ref[...], w_ref[...],
        preferred_element_type=jnp.float32).astype(o_ref.dtype)


# --------------------------------------------------------------------------
# Wrapper: matches nn.Conv2d(nIn, nOut, (k,k), stride=s, padding=((k-1)//2)*d,
# dilation=d, bias=False) on NCHW input / OIHW weight.
# --------------------------------------------------------------------------
def dilated_conv(x_nchw, w_oihw, *, stride=1, dilation=1, block_m=4096,
                 compute_dtype=jnp.bfloat16, out_dtype=None,
                 pad_cout_lanes=False):
    B, Cin, H, W = x_nchw.shape
    Cout, Cin_w, kh, kw = w_oihw.shape
    assert Cin_w == Cin and kh == kw, "square kernel / matching channels only"
    k, d, s = kh, dilation, stride
    p = ((k - 1) // 2) * d
    out_dtype = out_dtype or x_nchw.dtype
    compute_dtype = compute_dtype or x_nchw.dtype
    in_itemsize = jnp.dtype(compute_dtype).itemsize
    out_itemsize = jnp.dtype(out_dtype).itemsize
    # Sublane rounding per streamed dtype: 8 for f32, 16 for bf16, 32 for int8.
    sub = {4: 8, 2: 16, 1: 32}.get(in_itemsize, 8)

    # NCHW -> NHWC so channels live in the 128-lane dim; cast once up front so
    # all im2col intermediates are already in the (narrow) compute dtype.
    x = jnp.transpose(x_nchw, (0, 2, 3, 1)).astype(compute_dtype)
    xp = jnp.pad(x, ((0, 0), (p, p), (p, p), (0, 0)))
    Hp, Wp = H + 2 * p, W + 2 * p
    Ho = (Hp - d * (k - 1) - 1) // s + 1
    Wo = (Wp - d * (k - 1) - 1) // s + 1
    M = B * Ho * Wo
    K = k * k * Cin

    # im2col: (M, k*k*Cin), tap-major (dy, dx) with Cin innermost.
    tap_slices = []
    for dy in range(k):
        for dx in range(k):
            tap_slices.append(
                xp[:, dy * d: dy * d + (Ho - 1) * s + 1: s,
                      dx * d: dx * d + (Wo - 1) * s + 1: s, :])
    taps = jnp.concatenate(tap_slices, axis=-1).reshape(M, K)

    # OIHW -> HWIO -> (k*k*Cin, Cout); same (dy, dx, Cin) ordering as taps.
    w = jnp.transpose(w_oihw, (2, 3, 1, 0)).reshape(K, Cout).astype(compute_dtype)

    # Optional lane-dense output (Cout padded to a multiple of 128). Off by
    # default: at small Cout this op is memory-bound and the extra writeback
    # bytes outweigh the unmasked-vst win.
    Cout_eff = _round_up(Cout, 128) if (pad_cout_lanes and Cout % 128) else Cout
    if Cout_eff != Cout:
        w = jnp.pad(w, ((0, 0), (0, Cout_eff - Cout)))

    # ---- Row tile selection -------------------------------------------------
    TM = _round_up(min(block_m, M), sub)
    vmem_budget = _vmem_budget_bytes()

    def _vmem_needed(tm):
        # double-buffered streamed taps + double-buffered output + resident W
        return (2 * tm * K * in_itemsize
                + 2 * tm * Cout_eff * out_itemsize
                + K * Cout_eff * in_itemsize)

    while TM > sub and _vmem_needed(TM) > vmem_budget - (4 << 20):
        TM = max(sub, _round_up(TM // 2, sub))

    # Prefer a TM that divides M so the 9x-sized taps slab needs no extra
    # jnp.pad HBM copy.
    if M % TM != 0:
        for cand in range(TM, sub - 1, -sub):
            if M % cand == 0 and cand >= max(sub, TM // 2):
                TM = cand
                break

    n_m = pl.cdiv(M, TM)
    Mpad = n_m * TM
    if Mpad != M:
        taps = jnp.pad(taps, ((0, 0), (0, 0))) if False else jnp.pad(
            taps, ((0, Mpad - M), (0, 0)))

    cost = pl.CostEstimate(
        flops=int(2 * M * K * Cout_eff),
        transcendentals=0,
        bytes_accessed=int(taps.size * in_itemsize + w.size * in_itemsize
                           + Mpad * Cout_eff * out_itemsize))

    out = pl.pallas_call(
        _dilated_conv_kernel,
        out_shape=jax.ShapeDtypeStruct((Mpad, Cout_eff), out_dtype),
        grid=(n_m,),
        in_specs=[
            # streamed row tiles of the im2col slab
            pl.BlockSpec((TM, K), lambda m: (m, 0)),
            # whole weight, constant block index -> DMA'd once, VMEM-resident
            pl.BlockSpec((K, Cout_eff), lambda m: (0, 0)),
        ],
        out_specs=pl.BlockSpec((TM, Cout_eff), lambda m: (m, 0)),
        compiler_params=pltpu.CompilerParams(
            dimension_semantics=("parallel",),      # shards across v7x's 2 TCs
            vmem_limit_bytes=int(vmem_budget)),
        cost_estimate=cost,
    )(taps, w)

    out = out[:M, :Cout].reshape(B, Ho, Wo, Cout)
    return jnp.transpose(out, (0, 3, 1, 2))   # back to NCHW


# --------------------------------------------------------------------------
# Reference + self-test
# --------------------------------------------------------------------------
def ref_forward(x, w, stride, dilation):
    k = w.shape[2]
    p = ((k - 1) // 2) * dilation
    return lax.conv_general_dilated(
        x, w, (stride, stride), [(p, p), (p, p)],
        rhs_dilation=(dilation, dilation),
        dimension_numbers=('NCHW', 'OIHW', 'NCHW'))


if __name__ == "__main__":
    key = jax.random.PRNGKey(0)
    kx, kw = jax.random.split(key)
    B, Cin, H, W = 2, 8, 16, 16
    Cout, k = 32, 3
    x = jax.random.normal(kx, (B, Cin, H, W), jnp.float32)
    w = jax.random.normal(kw, (Cout, Cin, k, k), jnp.float32) * 0.1

    # (stride, dilation) configurations the module supports.
    for s, d in [(1, 2), (2, 1)]:
        # Exactness check with the f32 streaming path.
        f32_fn = jax.jit(functools.partial(
            dilated_conv, stride=s, dilation=d, compute_dtype=jnp.float32))
        out = jax.block_until_ready(f32_fn(x, w))
        ref = ref_forward(x, w, s, d)
        assert out.shape == ref.shape, (out.shape, ref.shape)
        err = float(jnp.max(jnp.abs(out - ref)))
        assert jnp.allclose(out, ref, rtol=1e-3, atol=1e-3), err

        # Default fast path: bf16 streaming, f32 accumulation (looser tol).
        bf16_fn = jax.jit(functools.partial(dilated_conv, stride=s, dilation=d))
        out_bf = jax.block_until_ready(bf16_fn(x, w))
        assert out_bf.shape == ref.shape, (out_bf.shape, ref.shape)
        err_bf = float(jnp.max(jnp.abs(out_bf.astype(jnp.float32) - ref)))
        assert jnp.allclose(out_bf.astype(jnp.float32), ref,
                            rtol=5e-2, atol=5e-2), err_bf

    print("KERNEL_OK")
</pallas_src>

<mosaic_0001>
module attributes {stable_mosaic.version = 11 : i64} {
  func.func @_dilated_conv_kernel(%arg0: i32, %arg1: memref<512x72xf32, #tpu.memory_space<vmem>>, %arg2: memref<72x32xf32, #tpu.memory_space<vmem>>, %arg3: memref<512x32xf32, #tpu.memory_space<vmem>>) attributes {dimension_semantics = [#tpu.dimension_semantics<parallel>], iteration_bounds = array<i64: 1>, scalar_prefetch = 0 : i64, scratch_operands = 0 : i64, tpu.core_type = #tpu.core_type<tc>, window_params = [{transform_indices = @transform_0, window_bounds = array<i64: 512, 72>}, {pipeline_mode = #tpu.pipeline_mode<synchronous>, transform_indices = @transform_1, window_bounds = array<i64: 72, 32>}, {transform_indices = @transform_2, window_bounds = array<i64: 512, 32>}]} {
    %c0 = arith.constant 0 : index
    %c0_0 = arith.constant 0 : index
    %0 = vector.load %arg1[%c0, %c0_0] : memref<512x72xf32, #tpu.memory_space<vmem>>, vector<512x72xf32>
    %c0_1 = arith.constant 0 : index
    %c0_2 = arith.constant 0 : index
    %1 = vector.load %arg2[%c0_1, %c0_2] : memref<72x32xf32, #tpu.memory_space<vmem>>, vector<72x32xf32>
    %cst = arith.constant dense<0.000000e+00> : vector<512x32xf32>
    %2 = tpu.matmul %0, %1, %cst {dimension_numbers = #tpu.dot_dimension_numbers<[1], [0], [0], [1], [0, 0, 1, 1], [], []>} : vector<512x72xf32>, vector<72x32xf32>, vector<512x32xf32> -> vector<512x32xf32>
    %c0_3 = arith.constant 0 : index
    %c0_4 = arith.constant 0 : index
    %3 = vector.load %arg3[%c0_3, %c0_4] : memref<512x32xf32, #tpu.memory_space<vmem>>, vector<512x32xf32>
    tpu.vector_store %arg3[%c0_3, %c0_4], %2 {strides = array<i32>} : memref<512x32xf32, #tpu.memory_space<vmem>>, vector<512x32xf32>,
    return
  }
  func.func @transform_0(%arg0: i32) -> (i32, i32) {
    %c0_i32 = arith.constant 0 : i32
    %c0_i32_0 = arith.constant 0 : i32
    return %arg0, %c0_i32 : i32, i32
  }
  func.func @transform_1(%arg0: i32) -> (i32, i32) {
    %c0_i32 = arith.constant 0 : i32
    %c0_i32_0 = arith.constant 0 : i32
    %c0_i32_1 = arith.constant 0 : i32
    return %c0_i32, %c0_i32_0 : i32, i32
  }
  func.func @transform_2(%arg0: i32) -> (i32, i32) {
    %c0_i32 = arith.constant 0 : i32
    %c0_i32_0 = arith.constant 0 : i32
    return %arg0, %c0_i32 : i32, i32
  }
}

</mosaic_0001>

<bundles_post_ra>
// kernel: dilated_conv.1
= control target key start
LH: loop header
LB: loop body
LE: loop exit
PB: predicated region body
PF: predicated region fallthrough
CT: control target
= control target key end

     0   :  { %vm85_vm0 = vcmask 588800   ;;  %s1425_s0 = inlined_call_operand.vmem [shape: f32[512,72], index: 0, kind: input, shape index: {}]   ;;  %s1426_s1 = inlined_call_operand.vmem [shape: f32[72,32], index: 1, kind: input, shape index: {}]   ;;  %s1427_s2 = inlined_call_operand.hbm [shape: f32[512,32], index: 2, kind: output, shape index: {}]  }
   0x1   :  { %v76_v0 = vld [vmem:[%s1426_s1] sm:$0xff]  ;;  %v77_v1 = vld [vmem:[%s1426_s1 + $0x8] sm:$0xff]  ;;  %v78_v2 = vld [vmem:[%s1426_s1 + $0x10] sm:$0xff] }
   0x2   :  { %v995_v3 = vpack.c.bf16 %v77_v1, %v76_v0  ;;  %v79_v4 = vld [vmem:[%s1426_s1 + $0x18] sm:$0xff]  ;;  %v80_v6 = vld [vmem:[%s1426_s1 + $0x20] sm:$0xff]  ;;  %v81_v7 = vld [vmem:[%s1426_s1 + $0x28] sm:$0xff] }
   0x3   :  { %v999_v5 = vpack.c.bf16 %v79_v4, %v78_v2  ;;  %v12_v8 = vld [vmem:[%s1425_s0] sm:$0xff]  ;;  %v1003_v10 = vpack.c.bf16 %v81_v7, %v80_v6  ;;  %v82_v11 = vld [vmem:[%s1426_s1 + $0x30] sm:$0xff]  ;;  %v83_v12 = vld [vmem:[%s1426_s1 + $0x38] sm:$0xff] }
   0x4   :  { %996 = vmatprep.subr.bf16.mxu0 %v995_v3  ;;  %1011 = vmatprep.subr.bf16.mxu1 %v995_v3  ;;  %v44_v9 = vld [vmem:[%s1425_s0 + $0x100] sm:$0xff]  ;;  %v1007_v13 = vpack.c.bf16 %v83_v12, %v82_v11  ;;  %v13_v15 = vld [vmem:[%s1425_s0 + $0x8] sm:$0xff]  ;;  %v14_v17 = vld [vmem:[%s1425_s0 + $0x10] sm:$0xff] }
   0x5   :  { %998 = vmatpush3.bf16.msra.mxu0 %v995_v3  ;;  %1016 = vmatpush3.bf16.msra.mxu1 %v995_v3  ;;  %v84_v14 = vld [vmem:[%s1426_s1 + $0x40] sm:$0xff]  ;;  %v45_v16 = vld [vmem:[%s1425_s0 + $0x108] sm:$0xff]  ;;  %v46_v18 = vld [vmem:[%s1425_s0 + $0x110] sm:$0xff] }
   0x6   :  { %1000 = vmatprep.subr.bf16.mxu0 %v999_v5  ;;  %1012 = vmatprep.subr.bf16.mxu1 %v999_v5  ;;  %v15_v19 = vld [vmem:[%s1425_s0 + $0x18] sm:$0xff]  ;;  %v16_v21 = vld [vmem:[%s1425_s0 + $0x20] sm:$0xff] }
   0x7   :  { %899 = vmatprep.mubr.msk.f32.mxu0 %vm85_vm0, %v12_v8  ;;  %947 = vmatprep.mubr.msk.f32.mxu1 %vm85_vm0, %v44_v9  ;;  %v47_v20 = vld [vmem:[%s1425_s0 + $0x118] sm:$0xff]  ;;  %v48_v22 = vld [vmem:[%s1425_s0 + $0x120] sm:$0xff] }
   0x9   :  { %1002 = vmatpush3.bf16.msra.mxu0 %v999_v5  ;;  %1017 = vmatpush3.bf16.msra.mxu1 %v999_v5 }
   0xa   :  { %1004 = vmatprep.subr.bf16.mxu0 %v1003_v10  ;;  %1013 = vmatprep.subr.bf16.mxu1 %v1003_v10 }
   0xd   :  { %1006 = vmatpush3.bf16.msra.mxu0 %v1003_v10  ;;  %1018 = vmatpush3.bf16.msra.mxu1 %v1003_v10 }
   0xe   :  { %1008 = vmatprep.subr.bf16.mxu0 %v1007_v13  ;;  %1014 = vmatprep.subr.bf16.mxu1 %v1007_v13 }
  0x11   :  { %1010 = vmatpush3.bf16.msra.mxu0 %v1007_v13  ;;  %1019 = vmatpush3.bf16.msra.mxu1 %v1007_v13 }
  0x12   :  { %897 = vmatprep.subr.mxu0 %v84_v14  ;;  %1015 = vmatprep.subr.mxu1 %v84_v14 }
  0x15   :  { %898 = vmatpush3.msra.mxu0 %v84_v14  ;;  %1020 = vmatpush3.msra.mxu1 %v84_v14 }
  0x16   :  { %900 = vmatmul.mubr.msk.f32.vlgmr.msra.gmra.mrb[0].mxu0 %vm85_vm0, %v13_v15  ;;  %948 = vmatmul.mubr.msk.f32.vlgmr.msra.gmra.mrb[0].mxu1 %vm85_vm0, %v45_v16 }
  0x17   :  { %902 = vmatprep.mubr.msk.f32.mxu0 %vm85_vm0, %v14_v17  ;;  %950 = vmatprep.mubr.msk.f32.mxu1 %vm85_vm0, %v46_v18 }
  0x18   :  { %7 = vsyncpa [#allocation3], 0  ;;  %v17_v23 = vld [vmem:[%s1425_s0 + $0x28] sm:$0xff]  ;;  %v18_v25 = vld [vmem:[%s1425_s0 + $0x30] sm:$0xff]  ;;  %vm663_vm1 = vcmask 261120  }
  0x19   :  { %v49_v24 = vld [vmem:[%s1425_s0 + $0x128] sm:$0xff]  ;;  %v50_v26 = vld [vmem:[%s1425_s0 + $0x130] sm:$0xff]  ;;  %v19_v27 = vld [vmem:[%s1425_s0 + $0x38] sm:$0xff] }
  0x1a   :  { %903 = vmatmul.mubr.msk.f32.gmra.mrb[2].mxu0 %vm85_vm0, %v15_v19  ;;  %951 = vmatmul.mubr.msk.f32.gmra.mrb[2].mxu1 %vm85_vm0, %v47_v20  ;;  %v51_v28 = vld [vmem:[%s1425_s0 + $0x138] sm:$0xff]  ;;  %v20_v29 = vld [vmem:[%s1425_s0 + $0x40] sm:$0xff]  ;;  %v21_v31 = vld [vmem:[%s1425_s0 + $0x48] sm:$0xff] }
  0x1b   :  { %905 = vmatprep.mubr.msk.f32.mxu0 %vm85_vm0, %v16_v21  ;;  %953 = vmatprep.mubr.msk.f32.mxu1 %vm85_vm0, %v48_v22  ;;  %v52_v30 = vld [vmem:[%s1425_s0 + $0x140] sm:$0xff]  ;;  %v53_v32 = vld [vmem:[%s1425_s0 + $0x148] sm:$0xff]  ;;  %v22_v33 = vld [vmem:[%s1425_s0 + $0x50] sm:$0xff] }
  0x1c   :  { %v54_v34 = vld [vmem:[%s1425_s0 + $0x150] sm:$0xff]  ;;  %v23_v35 = vld [vmem:[%s1425_s0 + $0x58] sm:$0xff]  ;;  %v24_v37 = vld [vmem:[%s1425_s0 + $0x60] sm:$0xff] }
  0x1d   :  { %v55_v36 = vld [vmem:[%s1425_s0 + $0x158] sm:$0xff]  ;;  %v56_v38 = vld [vmem:[%s1425_s0 + $0x160] sm:$0xff]  ;;  %v25_v39 = vld [vmem:[%s1425_s0 + $0x68] sm:$0xff] }
  0x1e   :  { %906 = vmatmul.mubr.msk.f32.gmra.mrb[4].mxu0 %vm85_vm0, %v17_v23  ;;  %954 = vmatmul.mubr.msk.f32.gmra.mrb[4].mxu1 %vm85_vm0, %v49_v24  ;;  %v57_v40 = vld [vmem:[%s1425_s0 + $0x168] sm:$0xff]  ;;  %v26_v41 = vld [vmem:[%s1425_s0 + $0x70] sm:$0xff]  ;;  %v27_v43 = vld [vmem:[%s1425_s0 + $0x78] sm:$0xff] }
  0x1f   :  { %908 = vmatprep.mubr.msk.f32.mxu0 %vm85_vm0, %v18_v25  ;;  %956 = vmatprep.mubr.msk.f32.mxu1 %vm85_vm0, %v50_v26  ;;  %v58_v42 = vld [vmem:[%s1425_s0 + $0x170] sm:$0xff]  ;;  %v59_v44 = vld [vmem:[%s1425_s0 + $0x178] sm:$0xff]  ;;  %v28_v45 = vld [vmem:[%s1425_s0 + $0x80] sm:$0xff] }
  0x20   :  { %v60_v46 = vld [vmem:[%s1425_s0 + $0x180] sm:$0xff]  ;;  %v29_v47 = vld [vmem:[%s1425_s0 + $0x88] sm:$0xff]  ;;  %v30_v49 = vld [vmem:[%s1425_s0 + $0x90] sm:$0xff] }
  0x21   :  { %v61_v48 = vld [vmem:[%s1425_s0 + $0x188] sm:$0xff]  ;;  %v62_v50 = vld [vmem:[%s1425_s0 + $0x190] sm:$0xff]  ;;  %v31_v51 = vld [vmem:[%s1425_s0 + $0x98] sm:$0xff] }
  0x22   :  { %909 = vmatmul.mubr.msk.f32.gmra.mrb[6].mxu0 %vm85_vm0, %v19_v27  ;;  %957 = vmatmul.mubr.msk.f32.gmra.mrb[6].mxu1 %vm85_vm0, %v51_v28  ;;  %v63_v52 = vld [vmem:[%s1425_s0 + $0x198] sm:$0xff]  ;;  %v32_v53 = vld [vmem:[%s1425_s0 + $0xa0] sm:$0xff]  ;;  %v33_v55 = vld [vmem:[%s1425_s0 + $0xa8] sm:$0xff] }
  0x23   :  { %911 = vmatprep.mubr.msk.f32.mxu0 %vm85_vm0, %v20_v29  ;;  %959 = vmatprep.mubr.msk.f32.mxu1 %vm85_vm0, %v52_v30  ;;  %v64_v54 = vld [vmem:[%s1425_s0 + $0x1a0] sm:$0xff]  ;;  %v65_v56 = vld [vmem:[%s1425_s0 + $0x1a8] sm:$0xff]  ;;  %v34_v57 = vld [vmem:[%s1425_s0 + $0xb0] sm:$0xff] }
  0x24   :  { %v66_v58 = vld [vmem:[%s1425_s0 + $0x1b0] sm:$0xff]  ;;  %v35_v59 = vld [vmem:[%s1425_s0 + $0xb8] sm:$0xff]  ;;  %v36_v61 = vld [vmem:[%s1425_s0 + $0xc0] sm:$0xff] }
  0x25   :  { %v67_v60 = vld [vmem:[%s1425_s0 + $0x1b8] sm:$0xff]  ;;  %v68_v62 = vld [vmem:[%s1425_s0 + $0x1c0] sm:$0xff]  ;;  %v37_v63 = vld [vmem:[%s1425_s0 + $0xc8] sm:$0xff] }
  0x26   :  { %912 = vmatmul.mubr.msk.f32.gmra.mrb[8].mxu0 %vm85_vm0, %v21_v31  ;;  %960 = vmatmul.mubr.msk.f32.gmra.mrb[8].mxu1 %vm85_vm0, %v53_v32  ;;  %v69_v0 = vld [vmem:[%s1425_s0 + $0x1c8] sm:$0xff]  ;;  %v38_v1 = vld [vmem:[%s1425_s0 + $0xd0] sm:$0xff]  ;;  %v39_v3 = vld [vmem:[%s1425_s0 + $0xd8] sm:$0xff] }
  0x27   :  { %914 = vmatprep.mubr.msk.f32.mxu0 %vm85_vm0, %v22_v33  ;;  %962 = vmatprep.mubr.msk.f32.mxu1 %vm85_vm0, %v54_v34  ;;  %v70_v2 = vld [vmem:[%s1425_s0 + $0x1d0] sm:$0xff]  ;;  %v71_v4 = vld [vmem:[%s1425_s0 + $0x1d8] sm:$0xff]  ;;  %v40_v5 = vld [vmem:[%s1425_s0 + $0xe0] sm:$0xff] }
  0x28   :  { %v72_v6 = vld [vmem:[%s1425_s0 + $0x1e0] sm:$0xff]  ;;  %v41_v7 = vld [vmem:[%s1425_s0 + $0xe8] sm:$0xff]  ;;  %v42_v9 = vld [vmem:[%s1425_s0 + $0xf0] sm:$0xff] }
  0x29   :  { %v73_v8 = vld [vmem:[%s1425_s0 + $0x1e8] sm:$0xff]  ;;  %v74_v10 = vld [vmem:[%s1425_s0 + $0x1f0] sm:$0xff]  ;;  %v43_v11 = vld [vmem:[%s1425_s0 + $0xf8] sm:$0xff] }
  0x2a   :  { %915 = vmatmul.mubr.msk.f32.gmra.mrb[10].mxu0 %vm85_vm0, %v23_v35  ;;  %963 = vmatmul.mubr.msk.f32.gmra.mrb[10].mxu1 %vm85_vm0, %v55_v36  ;;  %v75_v12 = vld [vmem:[%s1425_s0 + $0x1f8] sm:$0xff]  ;;  %s1048_s0 = smov [#allocation2]  }
  0x2b   :  { %917 = vmatprep.mubr.msk.f32.mxu0 %vm85_vm0, %v24_v37  ;;  %965 = vmatprep.mubr.msk.f32.mxu1 %vm85_vm0, %v56_v38  ;;  %s733_s1 = sshll.u32 %s1048_s0, 4  ;;  %s734_s1 = int_to_ptr.vmem [resolvable:$true] %s733_s1 }
  0x2c   :  { %s1024_s11 = scalar_lea.vmem %s734_s1, 8192  ;;  %p1029_p1 = scmp.lt.s32.totalorder %s734_s1, %s734_s1 }
  0x2d   :  { %p1025_p0 = scmp.ne.s32.totalorder %s734_s1, %s1024_s11  ;;  %p1030_p2 = scmp.lt.s32.totalorder %s1024_s11, %s1024_s11 }
  0x2e   :  { %918 = vmatmul.mubr.msk.f32.gmra.mrb[12].mxu0 %vm85_vm0, %v25_v39  ;;  %966 = vmatmul.mubr.msk.f32.gmra.mrb[12].mxu1 %vm85_vm0, %v57_v40 }
  0x2f   :  { %920 = vmatprep.mubr.msk.f32.mxu0 %vm85_vm0, %v26_v41  ;;  %968 = vmatprep.mubr.msk.f32.mxu1 %vm85_vm0, %v58_v42  ;;  %p1031_p3 = por %p1030_p2, %p1029_p1 }
  0x31   :  { %p1032_p4 = pnand %p1031_p3, %p1025_p0 }
  0x32   :  { %921 = vmatmul.mubr.msk.f32.gmra.mrb[14].mxu0 %vm85_vm0, %v27_v43  ;;  %969 = vmatmul.mubr.msk.f32.gmra.mrb[14].mxu1 %vm85_vm0, %v59_v44 }
  0x33   :  { %923 = vmatprep.mubr.msk.f32.mxu0 %vm85_vm0, %v28_v45  ;;  %971 = vmatprep.mubr.msk.f32.mxu1 %vm85_vm0, %v60_v46 }
  0x36   :  { %924 = vmatmul.mubr.msk.f32.gmra.mrb[16].mxu0 %vm85_vm0, %v29_v47  ;;  %972 = vmatmul.mubr.msk.f32.gmra.mrb[16].mxu1 %vm85_vm0, %v61_v48 }
  0x37   :  { %926 = vmatprep.mubr.msk.f32.mxu0 %vm85_vm0, %v30_v49  ;;  %974 = vmatprep.mubr.msk.f32.mxu1 %vm85_vm0, %v62_v50 }
  0x3a   :  { %927 = vmatmul.mubr.msk.f32.gmra.mrb[18].mxu0 %vm85_vm0, %v31_v51  ;;  %975 = vmatmul.mubr.msk.f32.gmra.mrb[18].mxu1 %vm85_vm0, %v63_v52 }
  0x3b   :  { %929 = vmatprep.mubr.msk.f32.mxu0 %vm85_vm0, %v32_v53  ;;  %977 = vmatprep.mubr.msk.f32.mxu1 %vm85_vm0, %v64_v54 }
  0x3e   :  { %930 = vmatmul.mubr.msk.f32.gmra.mrb[20].mxu0 %vm85_vm0, %v33_v55  ;;  %978 = vmatmul.mubr.msk.f32.gmra.mrb[20].mxu1 %vm85_vm0, %v65_v56 }
  0x3f   :  { %932 = vmatprep.mubr.msk.f32.mxu0 %vm85_vm0, %v34_v57  ;;  %980 = vmatprep.mubr.msk.f32.mxu1 %vm85_vm0, %v66_v58 }
  0x42   :  { %933 = vmatmul.mubr.msk.f32.gmra.mrb[22].mxu0 %vm85_vm0, %v35_v59  ;;  %981 = vmatmul.mubr.msk.f32.gmra.mrb[22].mxu1 %vm85_vm0, %v67_v60 }
  0x43   :  { %935 = vmatprep.mubr.msk.f32.mxu0 %vm85_vm0, %v36_v61  ;;  %983 = vmatprep.mubr.msk.f32.mxu1 %vm85_vm0, %v68_v62 }
  0x46   :  { %936 = vmatmul.mubr.msk.f32.gmra.mrb[24].mxu0 %vm85_vm0, %v37_v63  ;;  %984 = vmatmul.mubr.msk.f32.gmra.mrb[24].mxu1 %vm85_vm0, %v69_v0 }
  0x47   :  { %938 = vmatprep.mubr.msk.f32.mxu0 %vm85_vm0, %v38_v1  ;;  %986 = vmatprep.mubr.msk.f32.mxu1 %vm85_vm0, %v70_v2 }
  0x4a   :  { %939 = vmatmul.mubr.msk.f32.gmra.mrb[26].mxu0 %vm85_vm0, %v39_v3  ;;  %987 = vmatmul.mubr.msk.f32.gmra.mrb[26].mxu1 %vm85_vm0, %v71_v4 }
  0x4b   :  { %941 = vmatprep.mubr.msk.f32.mxu0 %vm85_vm0, %v40_v5  ;;  %989 = vmatprep.mubr.msk.f32.mxu1 %vm85_vm0, %v72_v6 }
  0x4e   :  { %942 = vmatmul.mubr.msk.f32.gmra.mrb[28].mxu0 %vm85_vm0, %v41_v7  ;;  %990 = vmatmul.mubr.msk.f32.gmra.mrb[28].mxu1 %vm85_vm0, %v73_v8 }
  0x4f   :  { %944 = vmatprep.mubr.msk.f32.mxu0 %vm85_vm0, %v42_v9  ;;  %992 = vmatprep.mubr.msk.f32.mxu1 %vm85_vm0, %v74_v10 }
  0x52   :  { %945 = vmatmul.mubr.msk.f32.gmra.mrb[30].mxu0 %vm85_vm0, %v43_v11  ;;  %993 = vmatmul.mubr.msk.f32.gmra.mrb[30].mxu1 %vm85_vm0, %v75_v12 }
  0xe9   :  { %v901_v13 = vpop.f32.mrb[0].mxu0  ;;  %v949_v14 = vpop.f32.mrb[0].mxu1 }
  0xea   :  { %665 = vst.msk [vmem:[#allocation2 + $0x8] sm:$0xff] %vm663_vm1, %v901_v13  ;;  %697 = vst.msk [vmem:[#allocation2 + $0x108] sm:$0xff] %vm663_vm1, %v949_v14  ;;  %v344_v15 = vpop.f32.mrb[1].mxu0  ;;  %v504_v16 = vpop.f32.mrb[1].mxu1 }
  0xeb   :  { %664 = vst.msk [vmem:[#allocation2] sm:$0xff] %vm663_vm1, %v344_v15  ;;  %696 = vst.msk [vmem:[#allocation2 + $0x100] sm:$0xff] %vm663_vm1, %v504_v16 }
  0xed   :  { %v904_v17 = vpop.f32.mrb[2].mxu0  ;;  %v952_v18 = vpop.f32.mrb[2].mxu1 }
  0xee   :  { %667 = vst.msk [vmem:[#allocation2 + $0x18] sm:$0xff] %vm663_vm1, %v904_v17  ;;  %699 = vst.msk [vmem:[#allocation2 + $0x118] sm:$0xff] %vm663_vm1, %v952_v18  ;;  %v354_v19 = vpop.f32.mrb[3].mxu0  ;;  %v514_v20 = vpop.f32.mrb[3].mxu1 }
  0xef   :  { %666 = vst.msk [vmem:[#allocation2 + $0x10] sm:$0xff] %vm663_vm1, %v354_v19  ;;  %698 = vst.msk [vmem:[#allocation2 + $0x110] sm:$0xff] %vm663_vm1, %v514_v20 }
  0xf1   :  { %v907_v21 = vpop.f32.mrb[4].mxu0  ;;  %v955_v22 = vpop.f32.mrb[4].mxu1 }
  0xf2   :  { %669 = vst.msk [vmem:[#allocation2 + $0x28] sm:$0xff] %vm663_vm1, %v907_v21  ;;  %701 = vst.msk [vmem:[#allocation2 + $0x128] sm:$0xff] %vm663_vm1, %v955_v22  ;;  %v364_v23 = vpop.f32.mrb[5].mxu0  ;;  %v524_v24 = vpop.f32.mrb[5].mxu1 }
  0xf3   :  { %668 = vst.msk [vmem:[#allocation2 + $0x20] sm:$0xff] %vm663_vm1, %v364_v23  ;;  %700 = vst.msk [vmem:[#allocation2 + $0x120] sm:$0xff] %vm663_vm1, %v524_v24 }
  0xf5   :  { %v910_v25 = vpop.f32.mrb[6].mxu0  ;;  %v958_v26 = vpop.f32.mrb[6].mxu1 }
  0xf6   :  { %671 = vst.msk [vmem:[#allocation2 + $0x38] sm:$0xff] %vm663_vm1, %v910_v25  ;;  %703 = vst.msk [vmem:[#allocation2 + $0x138] sm:$0xff] %vm663_vm1, %v958_v26  ;;  %v374_v27 = vpop.f32.mrb[7].mxu0  ;;  %v534_v28 = vpop.f32.mrb[7].mxu1 }
  0xf7   :  { %670 = vst.msk [vmem:[#allocation2 + $0x30] sm:$0xff] %vm663_vm1, %v374_v27  ;;  %702 = vst.msk [vmem:[#allocation2 + $0x130] sm:$0xff] %vm663_vm1, %v534_v28 }
  0xf9   :  { %v913_v29 = vpop.f32.mrb[8].mxu0  ;;  %v961_v30 = vpop.f32.mrb[8].mxu1 }
  0xfa   :  { %673 = vst.msk [vmem:[#allocation2 + $0x48] sm:$0xff] %vm663_vm1, %v913_v29  ;;  %705 = vst.msk [vmem:[#allocation2 + $0x148] sm:$0xff] %vm663_vm1, %v961_v30  ;;  %v384_v31 = vpop.f32.mrb[9].mxu0  ;;  %v544_v32 = vpop.f32.mrb[9].mxu1 }
  0xfb   :  { %672 = vst.msk [vmem:[#allocation2 + $0x40] sm:$0xff] %vm663_vm1, %v384_v31  ;;  %704 = vst.msk [vmem:[#allocation2 + $0x140] sm:$0xff] %vm663_vm1, %v544_v32 }
  0xfd   :  { %v916_v33 = vpop.f32.mrb[10].mxu0  ;;  %v964_v34 = vpop.f32.mrb[10].mxu1 }
  0xfe   :  { %675 = vst.msk [vmem:[#allocation2 + $0x58] sm:$0xff] %vm663_vm1, %v916_v33  ;;  %707 = vst.msk [vmem:[#allocation2 + $0x158] sm:$0xff] %vm663_vm1, %v964_v34  ;;  %v394_v35 = vpop.f32.mrb[11].mxu0  ;;  %v554_v36 = vpop.f32.mrb[11].mxu1 }
  0xff   :  { %674 = vst.msk [vmem:[#allocation2 + $0x50] sm:$0xff] %vm663_vm1, %v394_v35  ;;  %706 = vst.msk [vmem:[#allocation2 + $0x150] sm:$0xff] %vm663_vm1, %v554_v36 }
 0x101   :  { %v919_v37 = vpop.f32.mrb[12].mxu0  ;;  %v967_v38 = vpop.f32.mrb[12].mxu1 }
 0x102   :  { %677 = vst.msk [vmem:[#allocation2 + $0x68] sm:$0xff] %vm663_vm1, %v919_v37  ;;  %709 = vst.msk [vmem:[#allocation2 + $0x168] sm:$0xff] %vm663_vm1, %v967_v38  ;;  %v404_v39 = vpop.f32.mrb[13].mxu0  ;;  %v564_v40 = vpop.f32.mrb[13].mxu1 }
 0x103   :  { %676 = vst.msk [vmem:[#allocation2 + $0x60] sm:$0xff] %vm663_vm1, %v404_v39  ;;  %708 = vst.msk [vmem:[#allocation2 + $0x160] sm:$0xff] %vm663_vm1, %v564_v40 }
 0x105   :  { %v922_v41 = vpop.f32.mrb[14].mxu0  ;;  %v970_v42 = vpop.f32.mrb[14].mxu1 }
 0x106   :  { %679 = vst.msk [vmem:[#allocation2 + $0x78] sm:$0xff] %vm663_vm1, %v922_v41  ;;  %711 = vst.msk [vmem:[#allocation2 + $0x178] sm:$0xff] %vm663_vm1, %v970_v42  ;;  %v414_v43 = vpop.f32.mrb[15].mxu0  ;;  %v574_v44 = vpop.f32.mrb[15].mxu1 }
 0x107   :  { %678 = vst.msk [vmem:[#allocation2 + $0x70] sm:$0xff] %vm663_vm1, %v414_v43  ;;  %710 = vst.msk [vmem:[#allocation2 + $0x170] sm:$0xff] %vm663_vm1, %v574_v44 }
 0x109   :  { %v925_v45 = vpop.f32.mrb[16].mxu0  ;;  %v973_v46 = vpop.f32.mrb[16].mxu1 }
 0x10a   :  { %681 = vst.msk [vmem:[#allocation2 + $0x88] sm:$0xff] %vm663_vm1, %v925_v45  ;;  %713 = vst.msk [vmem:[#allocation2 + $0x188] sm:$0xff] %vm663_vm1, %v973_v46  ;;  %v424_v47 = vpop.f32.mrb[17].mxu0  ;;  %v584_v48 = vpop.f32.mrb[17].mxu1 }
 0x10b   :  { %680 = vst.msk [vmem:[#allocation2 + $0x80] sm:$0xff] %vm663_vm1, %v424_v47  ;;  %712 = vst.msk [vmem:[#allocation2 + $0x180] sm:$0xff] %vm663_vm1, %v584_v48 }
 0x10d   :  { %v928_v49 = vpop.f32.mrb[18].mxu0  ;;  %v976_v50 = vpop.f32.mrb[18].mxu1 }
 0x10e   :  { %683 = vst.msk [vmem:[#allocation2 + $0x98] sm:$0xff] %vm663_vm1, %v928_v49  ;;  %715 = vst.msk [vmem:[#allocation2 + $0x198] sm:$0xff] %vm663_vm1, %v976_v50  ;;  %v434_v51 = vpop.f32.mrb[19].mxu0  ;;  %v594_v52 = vpop.f32.mrb[19].mxu1 }
 0x10f   :  { %682 = vst.msk [vmem:[#allocation2 + $0x90] sm:$0xff] %vm663_vm1, %v434_v51  ;;  %714 = vst.msk [vmem:[#allocation2 + $0x190] sm:$0xff] %vm663_vm1, %v594_v52 }
 0x111   :  { %v931_v53 = vpop.f32.mrb[20].mxu0  ;;  %v979_v54 = vpop.f32.mrb[20].mxu1 }
 0x112   :  { %685 = vst.msk [vmem:[#allocation2 + $0xa8] sm:$0xff] %vm663_vm1, %v931_v53  ;;  %717 = vst.msk [vmem:[#allocation2 + $0x1a8] sm:$0xff] %vm663_vm1, %v979_v54  ;;  %v444_v55 = vpop.f32.mrb[21].mxu0  ;;  %v604_v56 = vpop.f32.mrb[21].mxu1 }
 0x113   :  { %684 = vst.msk [vmem:[#allocation2 + $0xa0] sm:$0xff] %vm663_vm1, %v444_v55  ;;  %716 = vst.msk [vmem:[#allocation2 + $0x1a0] sm:$0xff] %vm663_vm1, %v604_v56 }
 0x115   :  { %v934_v57 = vpop.f32.mrb[22].mxu0  ;;  %v982_v58 = vpop.f32.mrb[22].mxu1 }
 0x116   :  { %687 = vst.msk [vmem:[#allocation2 + $0xb8] sm:$0xff] %vm663_vm1, %v934_v57  ;;  %719 = vst.msk [vmem:[#allocation2 + $0x1b8] sm:$0xff] %vm663_vm1, %v982_v58  ;;  %v454_v59 = vpop.f32.mrb[23].mxu0  ;;  %v614_v60 = vpop.f32.mrb[23].mxu1 }
 0x117   :  { %686 = vst.msk [vmem:[#allocation2 + $0xb0] sm:$0xff] %vm663_vm1, %v454_v59  ;;  %718 = vst.msk [vmem:[#allocation2 + $0x1b0] sm:$0xff] %vm663_vm1, %v614_v60 }
 0x119   :  { %v937_v61 = vpop.f32.mrb[24].mxu0  ;;  %v985_v62 = vpop.f32.mrb[24].mxu1 }
 0x11a   :  { %689 = vst.msk [vmem:[#allocation2 + $0xc8] sm:$0xff] %vm663_vm1, %v937_v61  ;;  %721 = vst.msk [vmem:[#allocation2 + $0x1c8] sm:$0xff] %vm663_vm1, %v985_v62  ;;  %v464_v63 = vpop.f32.mrb[25].mxu0  ;;  %v624_v0 = vpop.f32.mrb[25].mxu1 }
 0x11b   :  { %688 = vst.msk [vmem:[#allocation2 + $0xc0] sm:$0xff] %vm663_vm1, %v464_v63  ;;  %720 = vst.msk [vmem:[#allocation2 + $0x1c0] sm:$0xff] %vm663_vm1, %v624_v0 }
 0x11d   :  { %v940_v1 = vpop.f32.mrb[26].mxu0  ;;  %v988_v2 = vpop.f32.mrb[26].mxu1 }
 0x11e   :  { %691 = vst.msk [vmem:[#allocation2 + $0xd8] sm:$0xff] %vm663_vm1, %v940_v1  ;;  %723 = vst.msk [vmem:[#allocation2 + $0x1d8] sm:$0xff] %vm663_vm1, %v988_v2  ;;  %v474_v3 = vpop.f32.mrb[27].mxu0  ;;  %v634_v4 = vpop.f32.mrb[27].mxu1 }
 0x11f   :  { %690 = vst.msk [vmem:[#allocation2 + $0xd0] sm:$0xff] %vm663_vm1, %v474_v3  ;;  %722 = vst.msk [vmem:[#allocation2 + $0x1d0] sm:$0xff] %vm663_vm1, %v634_v4 }
 0x121   :  { %v943_v5 = vpop.f32.mrb[28].mxu0  ;;  %v991_v6 = vpop.f32.mrb[28].mxu1 }
 0x122   :  { %693 = vst.msk [vmem:[#allocation2 + $0xe8] sm:$0xff] %vm663_vm1, %v943_v5  ;;  %725 = vst.msk [vmem:[#allocation2 + $0x1e8] sm:$0xff] %vm663_vm1, %v991_v6  ;;  %v484_v7 = vpop.f32.mrb[29].mxu0  ;;  %v644_v8 = vpop.f32.mrb[29].mxu1 }
 0x123   :  { %692 = vst.msk [vmem:[#allocation2 + $0xe0] sm:$0xff] %vm663_vm1, %v484_v7  ;;  %724 = vst.msk [vmem:[#allocation2 + $0x1e0] sm:$0xff] %vm663_vm1, %v644_v8 }
 0x125   :  { %v946_v9 = vpop.f32.mrb[30].mxu0  ;;  %v994_v10 = vpop.f32.mrb[30].mxu1 }
 0x126   :  { %695 = vst.msk [vmem:[#allocation2 + $0xf8] sm:$0xff] %vm663_vm1, %v946_v9  ;;  %727 = vst.msk [vmem:[#allocation2 + $0x1f8] sm:$0xff] %vm663_vm1, %v994_v10  ;;  %v494_v11 = vpop.f32.mrb[31].mxu0  ;;  %v654_v12 = vpop.f32.mrb[31].mxu1 }
 0x127   :  { %694 = vst.msk [vmem:[#allocation2 + $0xf0] sm:$0xff] %vm663_vm1, %v494_v11  ;;  %726 = vst.msk [vmem:[#allocation2 + $0x1f0] sm:$0xff] %vm663_vm1, %v654_v12 }
 0x128   :  { %1035 = shalt.err (!%p1032_p4)
}
 0x129   :  { %s1036_s14 = scalar_lea.hbm %s1427_s2, 8192 }
 0x12a   :  { %p1037_p5 = scmp.ne.s32.totalorder %s1427_s2, %s1036_s14  ;;  %p1040_p6 = scmp.lt.u32.totalorder %s1036_s14, %s1427_s2 }
 0x12c   :  { %p1042_p7 = pnand %p1040_p6, %p1037_p5 }
 0x12e   :  { %1045 = shalt.err (!%p1042_p7)
}
 0x12f   :  { %s1049_s19 = smov 128   ;;  %s1050_s20 = smov 8  }
 0x130   :  { %739 = dma.vmem_to_hbm [thread:$0]  %s734_s1, 8192, %s1427_s2, [#allocation3], %s1049_s19, %s1049_s19, %s1050_s20  }
 0x131   :  { %1046 = dma.done.wait [#allocation3], 8192  }
 0x132   :  { %1047 = vsyncadd [#allocation3], 4294959104 }
 0x133   :  { %743 = vsyncpa [#allocation3], 1 }

</bundles_post_ra>
